<compile_context>
chip_gen: v7x
topology: tpu7x:2x2x1
jax: 0.10.0
libtpu: 0.0.40
codegen_flags: <defaults>
</compile_context>

<pallas_src>
import functools

import jax
import jax.numpy as jnp
from jax import lax
from jax.experimental import pallas as pl
from jax.experimental.pallas import tpu as pltpu

LANE = 128


# --------------------------------------------------------------------------
# small helpers
# --------------------------------------------------------------------------
def _round_up(v, m):
    return (v + m - 1) // m * m


def _fold_bn(gamma, beta, mean, var, eps):
    inv = (gamma / jnp.sqrt(var + eps)).astype(jnp.float32)
    return inv, (beta - mean * inv).astype(jnp.float32)


def _pad_last(a, target):
    pads = [(0, 0)] * (a.ndim - 1) + [(0, target - a.shape[-1])]
    return jnp.pad(a, pads)


def _vmem_limit(*byte_counts):
    need = 3 * sum(int(b) for b in byte_counts) + (4 << 20)
    return int(min(56 << 20, max(need, 16 << 20)))


# --------------------------------------------------------------------------
# Kernel A: [BN_a + ReLU] -> Conv3d (kt1,1,1) -> fused BN_b + ReLU
# --------------------------------------------------------------------------
def _stage_a_kernel(x_ref, scale_a_ref, shift_a_ref, w_ref, scale_b_ref,
                    shift_b_ref, o_ref, acc_ref, *, kt1, pt1, t_total,
                    apply_pre, compute_dtype):
    """grid = (N, T, kt1); last axis is the temporal-tap reduction.

    x_ref:        (1, 1, S, Cin_p)  one temporal slice, HW flattened
    scale/shift:  (1, Cin_p) / (1, Ci_gp) folded BN
    w_ref:        (1, Cin_p, Ci_gp) one temporal tap
    o_ref:        (1, 1, S, Ci_gp)
    acc_ref:      (S, Ci_gp) f32 VMEM accumulator
    """
    dt = pl.program_id(2)
    t_in = pl.program_id(1) + dt - pt1
    valid = jnp.logical_and(t_in >= 0, t_in < t_total)

    @pl.when(dt == 0)
    def _init():
        acc_ref[...] = jnp.zeros_like(acc_ref)

    @pl.when(valid)                      # skip zero-padded temporal taps
    def _accumulate():
        x = x_ref[0, 0]
        if apply_pre:
            a = jnp.maximum(x * scale_a_ref[...] + shift_a_ref[...], 0.0)
        else:
            a = x
        acc_ref[...] += jnp.dot(a.astype(compute_dtype),
                                w_ref[0].astype(compute_dtype),
                                preferred_element_type=jnp.float32)

    @pl.when(dt == kt1 - 1)
    def _epilogue():                     # fused branch2b pre-activation
        o_ref[0, 0] = jnp.maximum(
            acc_ref[...] * scale_b_ref[...] + shift_b_ref[...],
            0.0).astype(o_ref.dtype)


def _stage_a(x_rows, scale_a, shift_a, w_a, scale_b, shift_b, *, kt1,
             apply_pre, compute_dtype):
    n, t, s, cin_p = x_rows.shape
    ci_gp = w_a.shape[-1]
    pt1 = kt1 // 2
    kernel = functools.partial(
        _stage_a_kernel, kt1=kt1, pt1=pt1, t_total=t,
        apply_pre=apply_pre, compute_dtype=compute_dtype)
    vmem = _vmem_limit(4 * s * cin_p, 4 * cin_p * ci_gp, 4 * s * ci_gp,
                       4 * s * ci_gp, 8 * (cin_p + ci_gp))
    return pl.pallas_call(
        kernel,
        out_shape=jax.ShapeDtypeStruct((n, t, s, ci_gp), compute_dtype),
        grid_spec=pltpu.PrefetchScalarGridSpec(
            num_scalar_prefetch=0,
            grid=(n, t, kt1),
            in_specs=[
                pl.BlockSpec(
                    (1, 1, s, cin_p),
                    lambda b, i, dt: (b, jnp.clip(i + dt - pt1, 0, t - 1), 0, 0)),
                pl.BlockSpec((1, cin_p), lambda b, i, dt: (0, 0)),
                pl.BlockSpec((1, cin_p), lambda b, i, dt: (0, 0)),
                pl.BlockSpec((1, cin_p, ci_gp), lambda b, i, dt: (dt, 0, 0)),
                pl.BlockSpec((1, ci_gp), lambda b, i, dt: (0, 0)),
                pl.BlockSpec((1, ci_gp), lambda b, i, dt: (0, 0)),
            ],
            out_specs=pl.BlockSpec((1, 1, s, ci_gp),
                                   lambda b, i, dt: (b, i, 0, 0)),
            scratch_shapes=[pltpu.VMEM((s, ci_gp), jnp.float32)],
        ),
        compiler_params=pltpu.CompilerParams(
            dimension_semantics=("parallel", "parallel", "arbitrary"),
            vmem_limit_bytes=vmem),
    )(x_rows, scale_a, shift_a, w_a, scale_b, shift_b)


# --------------------------------------------------------------------------
# Kernel B+C: grouped Conv3d (kt3,3,3) -> fused BN_c + ReLU -> Conv3d 1x1x1
# --------------------------------------------------------------------------
def _stage_bc_kernel(xb_ref, wb_ref, scale_c_ref, shift_c_ref, wc_ref,
                     o_ref, acc_b_ref, acc_o_ref, *, kt9, groups, ts, pt3,
                     t_in_total, compute_dtype):
    """grid = (N, T_out, G, kt3*9); last two axes are reductions.

    xb_ref:       (1,1,1,Sb,cig_p)  spatial-tap-gathered, one group's channels
    wb_ref:       (1,1,cig_p,cog_p) one (tap, group) weight
    scale/shift:  (1,1,cog_p)       folded BN_c for this group's outputs
    wc_ref:       (1,cog_p,Cout_p)  branch2c rows for this group
    o_ref:        (1,1,Sb,Cout_p)
    acc_b_ref:    (Sb,cog_p)  f32  per-group conv_b accumulator
    acc_o_ref:    (Sb,Cout_p) f32  conv_c accumulator over groups
    """
    g = pl.program_id(2)
    kk = pl.program_id(3)
    dt = kk // 9
    t_in = pl.program_id(1) * ts + dt - pt3
    valid = jnp.logical_and(t_in >= 0, t_in < t_in_total)

    @pl.when(kk == 0)
    def _init_group():
        acc_b_ref[...] = jnp.zeros_like(acc_b_ref)

    @pl.when(jnp.logical_and(g == 0, kk == 0))
    def _init_out():
        acc_o_ref[...] = jnp.zeros_like(acc_o_ref)

    @pl.when(valid)                      # skip zero-padded temporal taps
    def _accumulate():
        acc_b_ref[...] += jnp.dot(xb_ref[0, 0, 0].astype(compute_dtype),
                                  wb_ref[0, 0].astype(compute_dtype),
                                  preferred_element_type=jnp.float32)

    @pl.when(kk == kt9 - 1)
    def _group_epilogue():               # fused BN_c+ReLU + branch2c partial
        h = jnp.maximum(acc_b_ref[...] * scale_c_ref[0] + shift_c_ref[0], 0.0)
        acc_o_ref[...] += jnp.dot(h.astype(compute_dtype),
                                  wc_ref[0].astype(compute_dtype),
                                  preferred_element_type=jnp.float32)

    @pl.when(jnp.logical_and(g == groups - 1, kk == kt9 - 1))
    def _write():
        o_ref[0, 0] = acc_o_ref[...].astype(o_ref.dtype)


def _stage_bc(xb, wb, scale_c, shift_c, wc, *, t_out, ts, kt3, compute_dtype):
    _, n, t_in_total, sb, _ = xb.shape
    kt9, groups, cg_p, _ = wb.shape
    cout_p = wc.shape[-1]
    pt3 = kt3 // 2
    kernel = functools.partial(
        _stage_bc_kernel, kt9=kt9, groups=groups, ts=ts, pt3=pt3,
        t_in_total=t_in_total, compute_dtype=compute_dtype)
    vmem = _vmem_limit(4 * sb * cg_p, 4 * cg_p * cg_p, 4 * cg_p * cout_p,
                       4 * sb * cout_p, 4 * sb * cg_p, 4 * sb * cout_p)

    def xb_map(b, i, g, kk):
        return (kk % 9, b,
                jnp.clip(i * ts + kk // 9 - pt3, 0, t_in_total - 1), 0, g)

    return pl.pallas_call(
        kernel,
        out_shape=jax.ShapeDtypeStruct((n, t_out, sb, cout_p), jnp.float32),
        grid_spec=pltpu.PrefetchScalarGridSpec(
            num_scalar_prefetch=0,
            grid=(n, t_out, groups, kt9),
            in_specs=[
                pl.BlockSpec((1, 1, 1, sb, cg_p), xb_map),
                pl.BlockSpec((1, 1, cg_p, cg_p),
                             lambda b, i, g, kk: (kk, g, 0, 0)),
                pl.BlockSpec((1, 1, cg_p), lambda b, i, g, kk: (g, 0, 0)),
                pl.BlockSpec((1, 1, cg_p), lambda b, i, g, kk: (g, 0, 0)),
                pl.BlockSpec((1, cg_p, cout_p), lambda b, i, g, kk: (g, 0, 0)),
            ],
            out_specs=pl.BlockSpec((1, 1, sb, cout_p),
                                   lambda b, i, g, kk: (b, i, 0, 0)),
            scratch_shapes=[pltpu.VMEM((sb, cg_p), jnp.float32),
                            pltpu.VMEM((sb, cout_p), jnp.float32)],
        ),
        compiler_params=pltpu.CompilerParams(
            dimension_semantics=("parallel", "parallel", "arbitrary",
                                 "arbitrary"),
            vmem_limit_bytes=vmem),
    )(xb, wb, scale_c, shift_c, wc)


# --------------------------------------------------------------------------
# Forward pass of PreactivatedBottleneckTransformation
# --------------------------------------------------------------------------
def preact_bottleneck_forward(x, params, cfg, compute_dtype=jnp.float32):
    n, c_in, t, h, w = x.shape
    kt1, kt3 = cfg["kt1"], cfg["kt3"]
    str1x1, str3x3 = cfg["str1x1"], cfg["str3x3"]
    ts = cfg["temporal_stride"]
    groups = cfg["num_groups"]
    eps = cfg["bn_eps"]
    dim_inner = params["w_b"].shape[0]
    dim_out = params["w_c"].shape[0]
    gsz = dim_inner // groups            # per-group channels (conv_b in == out)

    cin_p = _round_up(c_in, LANE)
    cg_p = _round_up(gsz, LANE)          # per-group channels, lane padded
    ci_gp = groups * cg_p                # grouped-padded "dim_inner"
    cout_p = _round_up(dim_out, LANE)
    pt3 = kt3 // 2

    # ---------------- branch2a ------------------------------------------
    # NCDHW -> NDHWC; the 1x1 spatial kernel with stride s is just an input
    # subsample; pad channels to a lane-dense multiple of 128.
    x_cl = jnp.transpose(x, (0, 2, 3, 4, 1)).astype(jnp.float32)
    x_cl = x_cl[:, :, ::str1x1, ::str1x1, :]
    ha, wa = x_cl.shape[2], x_cl.shape[3]
    x_rows = _pad_last(x_cl, cin_p).reshape(n, t, ha * wa, cin_p)

    if cfg["disable_pre_activation"]:
        scale_a = jnp.zeros((1, cin_p), jnp.float32)
        shift_a = jnp.zeros((1, cin_p), jnp.float32)
        apply_pre = False
    else:
        sa_, sha_ = _fold_bn(params["bn_a_gamma"], params["bn_a_beta"],
                             params["bn_a_mean"], params["bn_a_var"], eps)
        scale_a = _pad_last(sa_, cin_p).reshape(1, cin_p)
        shift_a = _pad_last(sha_, cin_p).reshape(1, cin_p)
        apply_pre = True

    # conv_a weight (dim_inner, c_in, kt1, 1, 1) -> (kt1, cin_p, ci_gp) with
    # output channels laid out group-by-group (each group padded to cg_p) so
    # branch2b can slice one group per grid step.
    wa_ = jnp.transpose(params["w_a"][:, :, :, 0, 0], (2, 1, 0))
    wa_ = wa_.reshape(kt1, c_in, groups, gsz)
    wa_ = jnp.pad(wa_, ((0, 0), (0, cin_p - c_in), (0, 0), (0, cg_p - gsz)))
    wa_ = wa_.reshape(kt1, cin_p, ci_gp).astype(compute_dtype)

    sb_, shb_ = _fold_bn(params["bn_b_gamma"], params["bn_b_beta"],
                         params["bn_b_mean"], params["bn_b_var"], eps)
    scale_b = jnp.pad(sb_.reshape(groups, gsz),
                      ((0, 0), (0, cg_p - gsz))).reshape(1, ci_gp)
    shift_b = jnp.pad(shb_.reshape(groups, gsz),
                      ((0, 0), (0, cg_p - gsz))).reshape(1, ci_gp)

    y = _stage_a(x_rows, scale_a, shift_a, wa_, scale_b, shift_b,
                 kt1=kt1, apply_pre=apply_pre, compute_dtype=compute_dtype)
    # y == relu(bn_b(conv_a(relu(bn_a(x))))), shape (n, t, ha*wa, ci_gp)

    # ---------------- branch2b + branch2c --------------------------------
    ho = (ha - 1) // str3x3 + 1
    wo = (wa - 1) // str3x3 + 1
    t_out = (t + 2 * pt3 - kt3) // ts + 1

    # Zero spatial pad (valid: BN_b+ReLU already applied) and gather the 9
    # strided spatial taps in JAX so the kernel computes only the strided
    # output rows with full-tile matmuls.
    y5 = jnp.pad(y.reshape(n, t, ha, wa, ci_gp),
                 ((0, 0), (0, 0), (1, 1), (1, 1), (0, 0)))
    taps = [y5[:, :, dh:dh + (ho - 1) * str3x3 + 1:str3x3,
               dw:dw + (wo - 1) * str3x3 + 1:str3x3, :]
            for dh in range(3) for dw in range(3)]
    xb = jnp.stack(taps, axis=0).reshape(9, n, t, ho * wo, ci_gp)

    # grouped conv_b weight -> (kt3*9, G, cg_p, cg_p) (true per-group matmuls,
    # no dense block-diagonal zeros on the MXU)
    wb_ = params["w_b"].astype(jnp.float32)                 # (ci, gsz, kt3,3,3)
    wb_ = wb_.reshape(groups, gsz, gsz, kt3, 3, 3)
    wb_ = jnp.transpose(wb_, (3, 4, 5, 0, 2, 1))            # (kt3,3,3,G,in,out)
    wb_ = jnp.pad(wb_, ((0, 0), (0, 0), (0, 0), (0, 0),
                        (0, cg_p - gsz), (0, cg_p - gsz)))
    wb_ = wb_.reshape(kt3 * 9, groups, cg_p, cg_p).astype(compute_dtype)

    sc_, shc_ = _fold_bn(params["bn_c_gamma"], params["bn_c_beta"],
                         params["bn_c_mean"], params["bn_c_var"], eps)
    scale_c = jnp.pad(sc_.reshape(groups, 1, gsz),
                      ((0, 0), (0, 0), (0, cg_p - gsz)))
    shift_c = jnp.pad(shc_.reshape(groups, 1, gsz),
                      ((0, 0), (0, 0), (0, cg_p - gsz)))

    # conv_c weight rows grouped the same way: (G, cg_p, cout_p)
    wc_ = jnp.transpose(params["w_c"][:, :, 0, 0, 0], (1, 0))
    wc_ = wc_.reshape(groups, gsz, dim_out)
    wc_ = jnp.pad(wc_, ((0, 0), (0, cg_p - gsz), (0, cout_p - dim_out)))
    wc_ = wc_.astype(compute_dtype)

    o = _stage_bc(xb, wb_, scale_c, shift_c, wc_, t_out=t_out, ts=ts,
                  kt3=kt3, compute_dtype=compute_dtype)
    o = o.reshape(n, t_out, ho, wo, cout_p)[..., :dim_out]
    return jnp.transpose(o, (0, 4, 1, 2, 3))                # back to NCDHW


# --------------------------------------------------------------------------
# Pure-JAX reference (mirrors PyTorch Conv3d / eval-mode BatchNorm3d)
# --------------------------------------------------------------------------
def reference_forward(x, p, cfg):
    eps = cfg["bn_eps"]

    def bn_relu(hh, g, b, m, v):
        s = (1, -1, 1, 1, 1)
        hh = (hh - m.reshape(s)) / jnp.sqrt(v.reshape(s) + eps) * g.reshape(s) \
            + b.reshape(s)
        return jnp.maximum(hh, 0.0)

    def conv(hh, ww, stride, padding, groups=1):
        dn = lax.conv_dimension_numbers(hh.shape, ww.shape,
                                        ("NCDHW", "OIDHW", "NCDHW"))
        return lax.conv_general_dilated(
            hh, ww, window_strides=stride,
            padding=[(q, q) for q in padding],
            dimension_numbers=dn, feature_group_count=groups,
            precision=lax.Precision.HIGHEST)

    hh = x
    if not cfg["disable_pre_activation"]:
        hh = bn_relu(hh, p["bn_a_gamma"], p["bn_a_beta"],
                     p["bn_a_mean"], p["bn_a_var"])
    hh = conv(hh, p["w_a"], (1, cfg["str1x1"], cfg["str1x1"]),
              (cfg["kt1"] // 2, 0, 0))
    hh = bn_relu(hh, p["bn_b_gamma"], p["bn_b_beta"],
                 p["bn_b_mean"], p["bn_b_var"])
    hh = conv(hh, p["w_b"],
              (cfg["temporal_stride"], cfg["str3x3"], cfg["str3x3"]),
              (cfg["kt3"] // 2, 1, 1), groups=cfg["num_groups"])
    hh = bn_relu(hh, p["bn_c_gamma"], p["bn_c_beta"],
                 p["bn_c_mean"], p["bn_c_var"])
    hh = conv(hh, p["w_c"], (1, 1, 1), (0, 0, 0))
    return hh


# --------------------------------------------------------------------------
if __name__ == "__main__":
    dim_in, dim_out, dim_inner = 8, 16, 8
    temporal_kernel_size = 3
    temporal_conv_1x1 = True
    temporal_stride, spatial_stride = 2, 2
    num_groups = 2
    spatial_stride_1x1 = False
    disable_pre_activation = False
    bn_eps = 1e-5
    N, T, H, W = 2, 4, 8, 8

    kt1, kt3 = ((temporal_kernel_size, 1) if temporal_conv_1x1
                else (1, temporal_kernel_size))
    str1x1, str3x3 = ((spatial_stride, 1) if spatial_stride_1x1
                      else (1, spatial_stride))
    cfg = dict(kt1=kt1, kt3=kt3, str1x1=str1x1, str3x3=str3x3,
               temporal_stride=temporal_stride, num_groups=num_groups,
               bn_eps=bn_eps, disable_pre_activation=disable_pre_activation)

    key = jax.random.PRNGKey(0)
    ks = jax.random.split(key, 16)
    params = dict(
        bn_a_gamma=jax.random.uniform(ks[0], (dim_in,), jnp.float32, 0.5, 1.5),
        bn_a_beta=0.1 * jax.random.normal(ks[1], (dim_in,), jnp.float32),
        bn_a_mean=0.1 * jax.random.normal(ks[2], (dim_in,), jnp.float32),
        bn_a_var=jax.random.uniform(ks[3], (dim_in,), jnp.float32, 0.5, 1.5),
        w_a=0.1 * jax.random.normal(ks[4], (dim_inner, dim_in, kt1, 1, 1),
                                    jnp.float32),
        bn_b_gamma=jax.random.uniform(ks[5], (dim_inner,), jnp.float32, 0.5, 1.5),
        bn_b_beta=0.1 * jax.random.normal(ks[6], (dim_inner,), jnp.float32),
        bn_b_mean=0.1 * jax.random.normal(ks[7], (dim_inner,), jnp.float32),
        bn_b_var=jax.random.uniform(ks[8], (dim_inner,), jnp.float32, 0.5, 1.5),
        w_b=0.1 * jax.random.normal(
            ks[9], (dim_inner, dim_inner // num_groups, kt3, 3, 3), jnp.float32),
        bn_c_gamma=jax.random.uniform(ks[10], (dim_inner,), jnp.float32, 0.5, 1.5),
        bn_c_beta=0.1 * jax.random.normal(ks[11], (dim_inner,), jnp.float32),
        bn_c_mean=0.1 * jax.random.normal(ks[12], (dim_inner,), jnp.float32),
        bn_c_var=jax.random.uniform(ks[13], (dim_inner,), jnp.float32, 0.5, 1.5),
        w_c=0.1 * jax.random.normal(ks[14], (dim_out, dim_inner, 1, 1, 1),
                                    jnp.float32),
    )

    x = jax.random.normal(ks[15], (N, dim_in, T, H, W), jnp.float32)

    ref = jax.block_until_ready(reference_forward(x, params, cfg))

    # f32 operand path
    out_f32 = jax.block_until_ready(
        preact_bottleneck_forward(x, params, cfg, compute_dtype=jnp.float32))
    assert out_f32.shape == ref.shape, (out_f32.shape, ref.shape)
    if not jnp.allclose(out_f32, ref, rtol=2e-2, atol=2e-2):
        raise AssertionError(
            f"f32 mismatch, max abs err = {jnp.max(jnp.abs(out_f32 - ref))}")

    # bf16 MXU-operand path (recommended on v6e/v7x); f32 accumulation.
    out_bf16 = jax.block_until_ready(
        preact_bottleneck_forward(x, params, cfg, compute_dtype=jnp.bfloat16))
    if not jnp.allclose(out_bf16, ref, rtol=7e-2, atol=7e-2):
        raise AssertionError(
            f"bf16 mismatch, max abs err = {jnp.max(jnp.abs(out_bf16 - ref))}")

    print("KERNEL_OK")
</pallas_src>

<mosaic_0001>
module attributes {stable_mosaic.version = 11 : i64} {
  func.func @_stage_a_kernel(%arg0: i32, %arg1: i32, %arg2: i32, %arg3: memref<1x1x64x128xf32, #tpu.memory_space<vmem>>, %arg4: memref<1x128xf32, #tpu.memory_space<vmem>>, %arg5: memref<1x128xf32, #tpu.memory_space<vmem>>, %arg6: memref<1x128x256xf32, #tpu.memory_space<vmem>>, %arg7: memref<1x256xf32, #tpu.memory_space<vmem>>, %arg8: memref<1x256xf32, #tpu.memory_space<vmem>>, %arg9: memref<1x1x64x256xf32, #tpu.memory_space<vmem>>, %arg10: memref<64x256xf32, #tpu.memory_space<vmem>>) attributes {dimension_semantics = [#tpu.dimension_semantics<parallel>, #tpu.dimension_semantics<parallel>, #tpu.dimension_semantics<arbitrary>], iteration_bounds = array<i64: 2, 4, 3>, scalar_prefetch = 0 : i64, scratch_operands = 1 : i64, tpu.core_type = #tpu.core_type<tc>, window_params = [{transform_indices = @transform_0, window_bounds = array<i64: 1, 1, 64, 128>}, {pipeline_mode = #tpu.pipeline_mode<synchronous>, transform_indices = @transform_1, window_bounds = array<i64: 1, 128>}, {pipeline_mode = #tpu.pipeline_mode<synchronous>, transform_indices = @transform_2, window_bounds = array<i64: 1, 128>}, {transform_indices = @transform_3, window_bounds = array<i64: 1, 128, 256>}, {pipeline_mode = #tpu.pipeline_mode<synchronous>, transform_indices = @transform_4, window_bounds = array<i64: 1, 256>}, {pipeline_mode = #tpu.pipeline_mode<synchronous>, transform_indices = @transform_5, window_bounds = array<i64: 1, 256>}, {transform_indices = @transform_6, window_bounds = array<i64: 1, 1, 64, 256>}]} {
    %0 = arith.addi %arg1, %arg2 : i32
    %c1_i32 = arith.constant 1 : i32
    %1 = arith.subi %0, %c1_i32 : i32
    %c0_i32 = arith.constant 0 : i32
    %2 = arith.cmpi sge, %1, %c0_i32 : i32
    %c4_i32 = arith.constant 4 : i32
    %3 = arith.cmpi slt, %1, %c4_i32 : i32
    %4 = arith.andi %2, %3 : i1
    %c0_i32_0 = arith.constant 0 : i32
    %5 = arith.cmpi eq, %arg2, %c0_i32_0 : i32
    %6 = arith.extui %5 : i1 to i32
    %c0_i32_1 = arith.constant 0 : i32
    %7 = arith.cmpi ne, %6, %c0_i32_1 : i32
    scf.if %7 {
      %cst = arith.constant 0.000000e+00 : f32
      %13 = vector.broadcast %cst : f32 to vector<64x256xf32>
      %c0 = arith.constant 0 : index
      %c0_4 = arith.constant 0 : index
      %14 = vector.load %arg10[%c0, %c0_4] : memref<64x256xf32, #tpu.memory_space<vmem>>, vector<64x256xf32>
      tpu.vector_store %arg10[%c0, %c0_4], %13 {strides = array<i32>} : memref<64x256xf32, #tpu.memory_space<vmem>>, vector<64x256xf32>,
    } else {
    }
    %8 = arith.extui %4 : i1 to i32
    %c0_i32_2 = arith.constant 0 : i32
    %9 = arith.cmpi ne, %8, %c0_i32_2 : i32
    scf.if %9 {
      %c0 = arith.constant 0 : index
      %c0_4 = arith.constant 0 : index
      %c0_5 = arith.constant 0 : index
      %c0_6 = arith.constant 0 : index
      %13 = vector.load %arg3[%c0, %c0_4, %c0_5, %c0_6] : memref<1x1x64x128xf32, #tpu.memory_space<vmem>>, vector<1x1x64x128xf32>
      %14 = vector.shape_cast %13 : vector<1x1x64x128xf32> to vector<64x128xf32>
      %c0_7 = arith.constant 0 : index
      %c0_8 = arith.constant 0 : index
      %15 = vector.load %arg4[%c0_7, %c0_8] : memref<1x128xf32, #tpu.memory_space<vmem>>, vector<1x128xf32>
      %16 = vector.broadcast %15 : vector<1x128xf32> to vector<64x128xf32>
      %17 = arith.mulf %14, %16 : vector<64x128xf32>
      %c0_9 = arith.constant 0 : index
      %c0_10 = arith.constant 0 : index
      %18 = vector.load %arg5[%c0_9, %c0_10] : memref<1x128xf32, #tpu.memory_space<vmem>>, vector<1x128xf32>
      %19 = vector.broadcast %18 : vector<1x128xf32> to vector<64x128xf32>
      %20 = arith.addf %17, %19 : vector<64x128xf32>
      %cst = arith.constant 0.000000e+00 : f32
      %21 = vector.broadcast %cst : f32 to vector<64x128xf32>
      %22 = arith.maximumf %20, %21 : vector<64x128xf32>
      %c0_11 = arith.constant 0 : index
      %c0_12 = arith.constant 0 : index
      %23 = vector.load %arg10[%c0_11, %c0_12] : memref<64x256xf32, #tpu.memory_space<vmem>>, vector<64x256xf32>
      %c0_13 = arith.constant 0 : index
      %c0_14 = arith.constant 0 : index
      %c0_15 = arith.constant 0 : index
      %24 = vector.load %arg6[%c0_13, %c0_14, %c0_15] : memref<1x128x256xf32, #tpu.memory_space<vmem>>, vector<1x128x256xf32>
      %25 = vector.shape_cast %24 : vector<1x128x256xf32> to vector<128x256xf32>
      %cst_16 = arith.constant dense<0.000000e+00> : vector<64x256xf32>
      %26 = tpu.matmul %22, %25, %cst_16 {dimension_numbers = #tpu.dot_dimension_numbers<[1], [0], [0], [1], [0, 0, 1, 1], [], []>} : vector<64x128xf32>, vector<128x256xf32>, vector<64x256xf32> -> vector<64x256xf32>
      %27 = arith.addf %23, %26 : vector<64x256xf32>
      %c0_17 = arith.constant 0 : index
      %c0_18 = arith.constant 0 : index
      %28 = vector.load %arg10[%c0_17, %c0_18] : memref<64x256xf32, #tpu.memory_space<vmem>>, vector<64x256xf32>
      tpu.vector_store %arg10[%c0_17, %c0_18], %27 {strides = array<i32>} : memref<64x256xf32, #tpu.memory_space<vmem>>, vector<64x256xf32>,
    } else {
    }
    %c2_i32 = arith.constant 2 : i32
    %10 = arith.cmpi eq, %arg2, %c2_i32 : i32
    %11 = arith.extui %10 : i1 to i32
    %c0_i32_3 = arith.constant 0 : i32
    %12 = arith.cmpi ne, %11, %c0_i32_3 : i32
    scf.if %12 {
      %c0 = arith.constant 0 : index
      %c0_4 = arith.constant 0 : index
      %13 = vector.load %arg10[%c0, %c0_4] : memref<64x256xf32, #tpu.memory_space<vmem>>, vector<64x256xf32>
      %c0_5 = arith.constant 0 : index
      %c0_6 = arith.constant 0 : index
      %14 = vector.load %arg7[%c0_5, %c0_6] : memref<1x256xf32, #tpu.memory_space<vmem>>, vector<1x256xf32>
      %15 = vector.broadcast %14 : vector<1x256xf32> to vector<64x256xf32>
      %16 = arith.mulf %13, %15 : vector<64x256xf32>
      %c0_7 = arith.constant 0 : index
      %c0_8 = arith.constant 0 : index
      %17 = vector.load %arg8[%c0_7, %c0_8] : memref<1x256xf32, #tpu.memory_space<vmem>>, vector<1x256xf32>
      %18 = vector.broadcast %17 : vector<1x256xf32> to vector<64x256xf32>
      %19 = arith.addf %16, %18 : vector<64x256xf32>
      %cst = arith.constant 0.000000e+00 : f32
      %20 = vector.broadcast %cst : f32 to vector<64x256xf32>
      %21 = arith.maximumf %19, %20 : vector<64x256xf32>
      %c0_9 = arith.constant 0 : index
      %c0_10 = arith.constant 0 : index
      %c0_11 = arith.constant 0 : index
      %c0_12 = arith.constant 0 : index
      %22 = vector.load %arg9[%c0_9, %c0_10, %c0_11, %c0_12] : memref<1x1x64x256xf32, #tpu.memory_space<vmem>>, vector<1x1x64x256xf32>
      %23 = vector.shape_cast %22 : vector<1x1x64x256xf32> to vector<64x256xf32>
      %24 = vector.shape_cast %21 : vector<64x256xf32> to vector<1x1x64x256xf32>
      tpu.vector_store %arg9[%c0_9, %c0_10, %c0_11, %c0_12], %24 {strides = array<i32>} : memref<1x1x64x256xf32, #tpu.memory_space<vmem>>, vector<1x1x64x256xf32>,
    } else {
    }
    return
  }
  func.func @transform_0(%arg0: i32, %arg1: i32, %arg2: i32) -> (i32, i32, i32, i32) {
    %0 = arith.addi %arg1, %arg2 : i32
    %c1_i32 = arith.constant 1 : i32
    %1 = arith.subi %0, %c1_i32 : i32
    %c0_i32 = arith.constant 0 : i32
    %c3_i32 = arith.constant 3 : i32
    %2 = arith.maxsi %c0_i32, %1 : i32
    %3 = arith.minsi %c3_i32, %2 : i32
    %c0_i32_0 = arith.constant 0 : i32
    %c0_i32_1 = arith.constant 0 : i32
    %c0_i32_2 = arith.constant 0 : i32
    return %arg0, %3, %c0_i32_0, %c0_i32_1 : i32, i32, i32, i32
  }
  func.func @transform_1(%arg0: i32, %arg1: i32, %arg2: i32) -> (i32, i32) {
    %c0_i32 = arith.constant 0 : i32
    %c0_i32_0 = arith.constant 0 : i32
    %c0_i32_1 = arith.constant 0 : i32
    return %c0_i32, %c0_i32_0 : i32, i32
  }
  func.func @transform_2(%arg0: i32, %arg1: i32, %arg2: i32) -> (i32, i32) {
    %c0_i32 = arith.constant 0 : i32
    %c0_i32_0 = arith.constant 0 : i32
    %c0_i32_1 = arith.constant 0 : i32
    return %c0_i32, %c0_i32_0 : i32, i32
  }
  func.func @transform_3(%arg0: i32, %arg1: i32, %arg2: i32) -> (i32, i32, i32) {
    %c0_i32 = arith.constant 0 : i32
    %c0_i32_0 = arith.constant 0 : i32
    %c0_i32_1 = arith.constant 0 : i32
    return %arg2, %c0_i32, %c0_i32_0 : i32, i32, i32
  }
  func.func @transform_4(%arg0: i32, %arg1: i32, %arg2: i32) -> (i32, i32) {
    %c0_i32 = arith.constant 0 : i32
    %c0_i32_0 = arith.constant 0 : i32
    %c0_i32_1 = arith.constant 0 : i32
    return %c0_i32, %c0_i32_0 : i32, i32
  }
  func.func @transform_5(%arg0: i32, %arg1: i32, %arg2: i32) -> (i32, i32) {
    %c0_i32 = arith.constant 0 : i32
    %c0_i32_0 = arith.constant 0 : i32
    %c0_i32_1 = arith.constant 0 : i32
    return %c0_i32, %c0_i32_0 : i32, i32
  }
  func.func @transform_6(%arg0: i32, %arg1: i32, %arg2: i32) -> (i32, i32, i32, i32) {
    %c0_i32 = arith.constant 0 : i32
    %c0_i32_0 = arith.constant 0 : i32
    %c0_i32_1 = arith.constant 0 : i32
    return %arg0, %arg1, %c0_i32, %c0_i32_0 : i32, i32, i32, i32
  }
}

</mosaic_0001>

<bundles_post_ra>
// kernel: tpu_custom_call.1
= control target key start
LH: loop header
LB: loop body
LE: loop exit
PB: predicated region body
PF: predicated region fallthrough
CT: control target
= control target key end

     0   :  { %s1868_s0 = inlined_call_operand.hbm [shape: f32[2,4,64,128], index: 0, kind: input, shape index: {}]   ;;  %s1869_s1 = inlined_call_operand.vmem [shape: f32[1,128], index: 1, kind: input, shape index: {}]   ;;  %s1870_s2 = inlined_call_operand.vmem [shape: f32[1,128], index: 2, kind: input, shape index: {}]   ;;  %s1871_s3 = inlined_call_operand.hbm [shape: f32[3,128,256], index: 3, kind: input, shape index: {}]   ;;  %s1872_s4 = inlined_call_operand.vmem [shape: f32[1,256], index: 4, kind: input, shape index: {}]   ;;  %s1873_s5 = inlined_call_operand.vmem [shape: f32[1,256], index: 5, kind: input, shape index: {}]   ;;  %s1874_s6 = inlined_call_operand.hbm [shape: f32[2,4,64,256], index: 6, kind: output, shape index: {}]  }
   0x1   :  { %1887 = sst [smem:[#allocation21_spill]] %s1869_s1 }
   0x2   :  { %1888 = sst [smem:[#allocation22_spill]] %s1870_s2 }
   0x3   :  { %1889 = sst [smem:[#allocation23_spill]] %s1872_s4 }
   0x4   :  { %1890 = sst [smem:[#allocation24_spill]] %s1873_s5 }
   0x5   :  { %1891 = sst [smem:[#allocation25_spill]] %s1874_s6 }
   0x6   :  { %11 = vsyncpa [#allocation4], 0 }
   0x7   :  { %13 = vsyncpa [#allocation4 + $0x1], 0 }
   0x8   :  { %14 = vsyncpa [#allocation7], 0 }
   0x9   :  { %16 = vsyncpa [#allocation7 + $0x1], 0 }
   0xa   :  { %17 = vsyncpa [#allocation5], 0 }
   0xb   :  { %19 = vsyncpa [#allocation5 + $0x1], 0  ;;  %s1397_s21 = smov 0   ;;  %s1399_s22 = smov 0  }
   0xc   :  { %s1401_s23 = smov 0   ;;  %s1403_s24 = smov 0  }
   0xd   :  { %s1405_s25 = smov 0   ;;  %s1407_s26 = smov 0  }
   0xe   :  { %s1409_s27 = smov 0   ;;  %s1411_s28 = smov 0  }
   0xf   :  { %s1413_s29 = smov 0   ;;  %s1415_s30 = smov 0  }
  0x10   :  { %s1417_s7 = smov 0   ;;  %s1419_s8 = smov 0  }
  0x11   :  { %s1421_s9 = smov 0   ;;  %s1423_s10 = smov 0  }
  0x12   :  { %s1425_s11 = smov 0   ;;  %s1427_s12 = smov 0  }
  0x13 LB: > { %1892 = sst [smem:[#allocation12_spill]] %s1297_s23  ;;  %s37_s15 = sadd.s32 1, %s1337_s9  ;;  %s1349_s12 = sphi %s1427_s12, %s25_s12   ;;  %s1345_s11 = sphi %s1425_s11, %s1950_s11   ;;  %s1341_s10 = sphi %s1423_s10, %s1936_s10   ;;  %s1337_s9 = sphi %s1421_s9, %s1949_s9   ;;  %s1333_s8 = sphi %s1419_s8, %s1948_s8   ;;  %s1329_s7 = sphi %s1417_s7, %s1947_s7   ;;  %s1325_s30 = sphi %s1415_s30, %s1946_s30   ;;  %s1321_s29 = sphi %s1413_s29, %s1934_s29   ;;  %s1317_s28 = sphi %s1411_s28, %s1945_s28   ;;  %s1313_s27 = sphi %s1409_s27, %s1944_s27   ;;  %s1309_s26 = sphi %s1407_s26, %s1943_s26   ;;  %s1305_s25 = sphi %s1405_s25, %s1942_s25   ;;  %s1301_s24 = sphi %s1403_s24, %s1941_s24   ;;  %s1297_s23 = sphi %s1401_s23, %s1932_s23   ;;  %s1293_s22 = sphi %s1399_s22, %s1940_s22   ;;  %s1289_s21 = sphi %s1397_s21, %s1938_s21  }
  0x14   : > { %1893 = sst [smem:[#allocation13_spill]] %s1321_s29  ;;  %s40_s16 = sadd.s32 1, %s1341_s10 }
  0x15   : > { %1894 = sst [smem:[#allocation14_spill]] %s1325_s30  ;;  %p38_p0 = scmp.ge.s32.totalorder %s37_s15, 3 }
  0x16   : > { %1895 = sst [smem:[#allocation15_spill]] %s1333_s8  ;;  %s44_s17 = sadd.s32 1, %s1345_s11 }
  0x17   : > { %1896 = sst [smem:[#allocation16_spill]] %s1341_s10  ;;  %s48_s18 = sadd.s32 %s1337_s9, %s1341_s10 }
  0x18   : > { %s1952_s15 = smov (%p38_p0, %s37_s15), 0  ;;  %s1954_s16 = smov (!%p38_p0, %s40_s16), %s1341_s10 }
  0x19   : > { %s871_s20 = sadd.s32 4294967295, %s48_s18  ;;  %p72_p1 = scmp.ne.s32.totalorder %s1321_s29, %s1317_s28 }
  0x1a   : > { %p42_p2 = scmp.ge.s32.totalorder %s1954_s16, 4  ;;  %p50_p3 = scmp.gt.s32.totalorder %s871_s20, 0 }
  0x1b   : > { %p872_p4 = scmp.lt.s32.totalorder %s871_s20, 3  ;;  %p1883_p5 = scmp.eq.s32.totalorder %s1349_s12, 0 }
  0x1c   : > { %s1956_s16 = smov (%p42_p2, %s1954_s16), 0  ;;  %s1958_s17 = smov (!%p42_p2, %s44_s17), %s1345_s11 }
  0x1d   : > { %1897 = sst [smem:[#allocation17_spill]] %s1956_s16  ;;  %s1960_s20 = smov (!%p50_p3, %s871_s20), 0 }
  0x1e   : > { %p46_p6 = scmp.ge.s32.totalorder %s1958_s17, 2  ;;  %s54_s14 = sadd.s32 %s1956_s16, %s1952_s15 }
  0x1f   : > { %s1962_s20 = smov (!%p872_p4, %s1960_s20), 3  ;;  %s877_s18 = sadd.s32 4294967295, %s54_s14 }
  0x20   : > { %s1964_s17 = smov (%p46_p6, %s1958_s17), 0  ;;  %p1505_p7 = por %p1883_p5, %p72_p1 }
  0x21   : > { %1898 = sst [smem:[#allocation18_spill]] %s1964_s17  ;;  %p56_p8 = scmp.gt.s32.totalorder %s877_s18, 0 }
  0x22   : > { %p878_p9 = scmp.lt.s32.totalorder %s877_s18, 3  ;;  %s60_s13 = ssub.s32 %s1345_s11, %s1964_s17 }
  0x23   : > { %p78_p10 = scmp.ne.s32.totalorder %s1317_s28, %s1313_s27  ;;  %s1966_s18 = smov (!%p56_p8, %s877_s18), 0 }
  0x24   : > { %s1900_s14 = sadd.s32 4294967295, %s1349_s12   ;;  %s199_s8 = ssub.s32 %s1341_s10, %s1956_s16 }
  0x25   : > { %p1515_p11 = scmp.eq.s32.totalorder %s1900_s14, 0  ;;  %s1968_s18 = smov (!%p878_p9, %s1966_s18), 3 }
  0x26   : > { %s200_s27 = sor.u32 %s199_s8, %s60_s13  ;;  %s61_s17 = ssub.s32 %s1962_s20, %s1968_s18 }
  0x27   : > { %p1523_p12 = por %p1515_p11, %p78_p10  ;;  %p201_p13 = scmp.eq.s32.totalorder %s200_s27, 0 }
  0x28   : > { %s62_s4 = sor.u32 %s61_s17, %s60_s13  ;;  %s203_s14 = sadd.s32 1, %s1297_s23 }
  0x29   : > { %s1902_s5 = scalar_select %p1523_p12, 1, 0 }
  0x2a   : > { %p63_p0 = scmp.eq.s32.totalorder %s62_s4, 0  ;;  %p213_p1 = scmp.ne.s32.totalorder %s1297_s23, %s1293_s22 }
  0x2b   : > { %s1532_s2 = scalar_select %p201_p13, %s1297_s23, %s203_s14  }
  0x2c   : > { %s1904_s16 = sadd.s32 1, %s1321_s29  ;;  %s1906_s1 = sadd.s32 4294967295, %s1349_s12  }
  0x2d   : > { %1903 = sst [smem:[#allocation19_spill]] %s1532_s2  ;;  %p214_p2 = scmp.eq.s32.totalorder %s1906_s1, 23 }
  0x2e   : > { %s1537_s10 = scalar_select %p63_p0, %s1321_s29, %s1904_s16  }
  0x2f   : > { %p219_p3 = scmp.ne.s32.totalorder %s1293_s22, %s1289_s21  ;;  %s1907_s30 = sadd.s32 4294967294, %s1349_s12  }
  0x30   : > { %1905 = sst [smem:[#allocation20_spill]] %s1537_s10  ;;  %p220_p4 = scmp.eq.s32.totalorder %s1907_s30, 23 }
  0x31   : > { %p1545_p6 = por %p214_p2, %p213_p1  ;;  %p1882_p8 = scmp.lt.s32.totalorder %s1349_s12, 24 }
  0x32   : > { %p1550_p9 = por %p220_p4, %p219_p3  ;;  %s252_s13 = sand.u32 1, %s1321_s29  }
  0x33   : > { %s1908_s8 = scalar_select %p1545_p6, 1, 0 }
  0x34   : > { %s1909_s4 = scalar_select %p1550_p9, 1, 0 }
  0x35   : > { %s885_s17 = sshll.u32 %s252_s13, 6  ;;  %s892_s16 = sshll.u32 %s1962_s20, 3 }
  0x36   : > { %s893_s18 = sshll.u32 %s1345_s11, 5  ;;  %s256_s27 = scalar_lea.vmem [#allocation3], %s885_s17 }
  0x37   : > { %s271_s14 = sshll.u32 %s256_s27, 4  ;;  %s268_s10 = sadd.s32 %s893_s18, %s892_s16  ;;  %s1557_s14 = int_to_ptr.vmem [resolvable:$true] %s271_s14 }
  0x38   : > { %s894_s1 = sshll.u32 %s268_s10, 7  ;;  %p1563_p10 = pnand %p1882_p8, %p1505_p7 }
  0x39   : > { %s1570_s29 = scalar_lea.hbm %s1868_s0, %s894_s1  ;;  %s1572_s20 = scalar_lea.sflag [#allocation4], %s252_s13 }
  0x3a   : > { %s1123_s10 = scalar_lea.hbm %s1570_s29, 1024  ;;  %p1125_p7 = pneg %p1563_p10 }
  0x3b   : > { %p1124_p13 = scmp.ne.s32.totalorder %s1570_s29, %s1123_s10  ;;  %s1128_s23 = scalar_lea.hbm %s1868_s0, 8192 }
  0x3c   : > { %p1129_p2 = scmp.lt.u32.totalorder %s1570_s29, %s1868_s0  ;;  %p1130_p3 = scmp.lt.u32.totalorder %s1128_s23, %s1123_s10 }
  0x3d   : > { %p1126_p0 = pnand %p1125_p7, %p1124_p13  ;;  %p1132_p8 = scmp.lt.u32.totalorder %s1123_s10, %s1570_s29 }
  0x3e   : > { %p1131_p4 = por %p1130_p3, %p1129_p2 }
  0x3f   : > { %p1127_p1 = pneg %p1126_p0 }
  0x40   : > { %p1133_p5 = por %p1132_p8, %p1131_p4 }
  0x42   : > { %p1134_p9 = pnand %p1133_p5, %p1127_p1 }
  0x44   : > { %1137 = shalt.err (!%p1134_p9)
}
  0x45   : > { %s1138_s13 = scalar_lea.vmem %s1557_s14, 1024  ;;  %s1351_s18 = smov [#allocation3]  }
  0x46   : > { %p1139_p13 = scmp.ne.s32.totalorder %s1557_s14, %s1138_s13  ;;  %s1143_s27 = sshll.u32 %s1351_s18, 4  ;;  %s1144_s27 = int_to_ptr.vmem [resolvable:$false] %s1143_s27 }
  0x47   : > { %s1145_s1 = scalar_lea.vmem %s1144_s27, 2048  ;;  %p1146_p12 = scmp.lt.s32.totalorder %s1557_s14, %s1144_s27 }
  0x48   : > { %p1141_p0 = pnand %p1139_p13, %p1125_p7  ;;  %p1147_p2 = scmp.lt.s32.totalorder %s1145_s1, %s1138_s13 }
  0x4a   : > { %p1142_p6 = pneg %p1141_p0  ;;  %p1148_p3 = por %p1147_p2, %p1146_p12 }
  0x4c   : > { %p1149_p8 = pnand %p1148_p3, %p1142_p6 }
  0x4e   : > { %1152 = shalt.err (!%p1149_p8)
}
  0x4f   : > { %s1352_s10 = smov 128   ;;  %s1353_s19 = smov 8  }
  0x50   : > { %977 = dma.hbm_to_vmem [thread:$0]  (!%p1563_p10), %s1570_s29, 1024, %s1557_s14, %s1572_s20, %s1352_s10, %s1352_s10, %s1353_s19  }
  0x51   : > { %p898_p5 = scmp.ge.s32.totalorder %s1349_s12, 1  ;;  %p300_p12 = scmp.lt.s32.totalorder %s1349_s12, 25 }
  0x52   : > { %s130_s23 = ssub.s32 %s1337_s9, %s1952_s15  ;;  %s133_s17 = sadd.s32 1, %s1309_s26 }
  0x53   : > { %p1602_p6 = pnand %p898_p5, %p300_p12  ;;  %p131_p9 = scmp.eq.s32.totalorder %s130_s23, 0 }
  0x54   : > { %p140_p7 = scmp.ne.s32.totalorder %s1309_s26, %s1305_s25  ;;  %p146_p1 = scmp.ne.s32.totalorder %s1305_s25, %s1301_s24 }
  0x55   : > { %s1614_s16 = scalar_select %p131_p9, %s1309_s26, %s133_s17  }
  0x56   : > { %p1912_p4 = scmp.eq.s32.totalorder %s1349_s12, 0  ;;  %p1620_p0 = por %p146_p1, %p1515_p11 }
  0x57   : > { %s281_s29 = sand.u32 1, %s1309_s26   ;;  %s919_s14 = sshll.u32 %s1337_s9, 12 }
  0x58   : > { %p142_p13 = por %p140_p7, %p1912_p4  ;;  %s895_s20 = sshll.u32 %s281_s29, 8 }
  0x59   : > { %s1913_s30 = scalar_select %p1620_p0, 1, 0 }
  0x5a   : > { %s1629_s27 = scalar_lea.hbm %s1871_s3, %s919_s14  ;;  %s285_s24 = scalar_lea.vmem [#allocation6], %s895_s20 }
  0x5b   : > { %s292_s1 = sshll.u32 %s285_s24, 4  ;;  %p1914_p10 = scmp.lt.s32.totalorder %s1349_s12, 24  ;;  %s1637_s1 = int_to_ptr.vmem [resolvable:$true] %s292_s1 }
  0x5c   : > { %s1639_s10 = scalar_lea.sflag [#allocation7], %s281_s29  ;;  %s1153_s19 = scalar_lea.hbm %s1629_s27, 4096 }
  0x5d   : > { %p1633_p2 = pnand %p1914_p10, %p142_p13  ;;  %p1154_p11 = scmp.ne.s32.totalorder %s1629_s27, %s1153_s19 }
  0x5e   : > { %s1158_s14 = scalar_lea.hbm %s1871_s3, 12288  ;;  %p1159_p12 = scmp.lt.u32.totalorder %s1629_s27, %s1871_s3 }
  0x5f   : > { %p1155_p3 = pneg %p1633_p2  ;;  %p1160_p9 = scmp.lt.u32.totalorder %s1158_s14, %s1153_s19 }
  0x60   : > { %p1162_p1 = scmp.lt.u32.totalorder %s1153_s19, %s1629_s27 }
  0x61   : > { %p1156_p8 = pnand %p1155_p3, %p1154_p11  ;;  %p1161_p7 = por %p1160_p9, %p1159_p12 }
  0x63   : > { %p1157_p5 = pneg %p1156_p8  ;;  %p1163_p4 = por %p1162_p1, %p1161_p7 }
  0x65   : > { %p1164_p13 = pnand %p1163_p4, %p1157_p5 }
  0x67   : > { %1167 = shalt.err (!%p1164_p13)
}
  0x68   : > { %s1168_s29 = scalar_lea.vmem %s1637_s1, 4096  ;;  %s1354_s18 = smov [#allocation6]  }
  0x69   : > { %p1169_p10 = scmp.ne.s32.totalorder %s1637_s1, %s1168_s29  ;;  %s1173_s24 = sshll.u32 %s1354_s18, 4  ;;  %s1174_s24 = int_to_ptr.vmem [resolvable:$false] %s1173_s24 }
  0x6a   : > { %s1175_s23 = scalar_lea.vmem %s1174_s24, 8192  ;;  %p1176_p0 = scmp.lt.s32.totalorder %s1637_s1, %s1174_s24 }
  0x6b   : > { %p1171_p11 = pnand %p1169_p10, %p1155_p3  ;;  %p1177_p12 = scmp.lt.s32.totalorder %s1175_s23, %s1168_s29 }
  0x6d   : > { %p1172_p8 = pneg %p1171_p11  ;;  %p1178_p9 = por %p1177_p12, %p1176_p0 }
  0x6f   : > { %p1179_p7 = pnand %p1178_p9, %p1172_p8 }
  0x71   : > { %1182 = shalt.err (!%p1179_p7)
}
  0x72   : > { %s1355_s19 = smov 256   ;;  %s1356_s17 = smov 16  }
  0x73   : > { %980 = dma.hbm_to_vmem [thread:$0]  (!%p1633_p2), %s1629_s27, 4096, %s1637_s1, %s1639_s10, %s1355_s19, %s1355_s19, %s1356_s17  }
  0x74   : > { %304 = sbr.rel (%p1602_p6) target bundleno = 470 (0x1d6), region = 44  ;;  %s306_s14 = sand.u32 (!%p1602_p6), 1, %s1317_s28  }
  0x75   : > { %s899_s20 = sshll.u32 (!%p1602_p6), %s306_s14, 6  ;;  %s307_s13 = scalar_lea.sflag (!%p1602_p6), [#allocation4], %s306_s14 }
  0x76   : > { %s1670_s29 = scalar_lea.vmem (!%p1602_p6), [#allocation3], %s899_s20  ;;  %p1916_p0 = scmp.ne.s32.totalorder (!%p1602_p6), %s1902_s5, 0 }
  0x7b   : > { %1276 = dma.done.wait (%p1916_p0), %s307_s13, 1024  }
  0x7c   : > { %1278 = vsyncadd (%p1916_p0), %s307_s13, 4294966272  ;;  %s315_s18 = sand.u32 1, %s1305_s25   ;;  %p1917_p6 = scmp.ne.s32.totalorder %s1913_s30, 0 }
  0x7d   : > { %s900_s6 = sshll.u32 %s315_s18, 8  ;;  %s316_s27 = scalar_lea.sflag [#allocation7], %s315_s18 }
  0x7e   : > { %s1677_s1 = scalar_lea.vmem [#allocation6], %s900_s6 }
  0x7f   : > { %1280 = dma.done.wait (%p1917_p6), %s316_s27, 4096  }
  0x80   : > { %1282 = vsyncadd (%p1917_p6), %s316_s27, 4294963200  ;;  %s1918_s2 = sld [smem:[#allocation14_spill]]  ;;  %s350_s10 = sand.u32 1, %s1293_s22  }
  0x81   : > { %s901_s5 = sshll.u32 %s350_s10, 7 }
  0x82   : > { %s1692_s17 = scalar_lea.vmem [#allocation8], %s901_s5 }
  0x86   : > { %s359_s24 = sadd.s32 %s1918_s2, %s1329_s7  ;;  %p903_p1 = scmp.ne.s32.totalorder %s1918_s2, 0 }
  0x87   : > { %s902_s23 = sadd.s32 4294967295, %s359_s24  ;;  %v1357_v0 = vmov (!%p903_p1), 0.0  }
  0x88   : > { %p361_p2 = scmp.ge.s32.totalorder %s902_s23, 0  ;;  %p362_p3 = scmp.lt.s32.totalorder %s902_s23, 4  ;;  %369 = vst [vmem:[#allocation2] sm:$0xff] (!%p903_p1), %v1357_v0  ;;  %370 = vst [vmem:[#allocation2 + $0x8] sm:$0xff] (!%p903_p1), %v1357_v0 }
  0x89   : > { %368 = sbr.rel (%p903_p1) target bundleno = 144 (0x90), region = 56  ;;  %371 = vst [vmem:[#allocation2 + $0x10] sm:$0xff] (!%p903_p1), %v1357_v0  ;;  %372 = vst [vmem:[#allocation2 + $0x18] sm:$0xff] (!%p903_p1), %v1357_v0 }
  0x8a   : > { %p1688_p5 = pnand %p362_p3, %p361_p2  ;;  %373 = vst [vmem:[#allocation2 + $0x20] sm:$0xff] (!%p903_p1), %v1357_v0  ;;  %374 = vst [vmem:[#allocation2 + $0x28] sm:$0xff] (!%p903_p1), %v1357_v0 }
  0x8b   : > { %375 = vst [vmem:[#allocation2 + $0x30] sm:$0xff] (!%p903_p1), %v1357_v0  ;;  %376 = vst [vmem:[#allocation2 + $0x38] sm:$0xff] (!%p903_p1), %v1357_v0 }
  0x8c   : > { %377 = vst [vmem:[#allocation2 + $0x40] sm:$0xff] (!%p903_p1), %v1357_v0  ;;  %378 = vst [vmem:[#allocation2 + $0x48] sm:$0xff] (!%p903_p1), %v1357_v0 }
  0x8d   : > { %379 = vst [vmem:[#allocation2 + $0x50] sm:$0xff] (!%p903_p1), %v1357_v0  ;;  %380 = vst [vmem:[#allocation2 + $0x58] sm:$0xff] (!%p903_p1), %v1357_v0 }
  0x8e   : > { %381 = vst [vmem:[#allocation2 + $0x60] sm:$0xff] (!%p903_p1), %v1357_v0  ;;  %382 = vst [vmem:[#allocation2 + $0x68] sm:$0xff] (!%p903_p1), %v1357_v0 }
  0x8f   : > { %383 = vst [vmem:[#allocation2 + $0x70] sm:$0xff] (!%p903_p1), %v1357_v0  ;;  %384 = vst [vmem:[#allocation2 + $0x78] sm:$0xff] (!%p903_p1), %v1357_v0 }
  0x90 PF: > { %386 = sbr.rel (%p1688_p5) target bundleno = 407 (0x197), region = 60  ;;  %v450_v1 = vld [vmem:[%s1677_s1 + $0x8] sm:$0xff] (!%p1688_p5)  ;;  %v452_v2 = vld [vmem:[%s1677_s1 + $0x18] sm:$0xff] (!%p1688_p5)  ;;  %v449_v3 = vld [vmem:[%s1677_s1] sm:$0xff] (!%p1688_p5)  ;;  %v1358_v8 = vmov (!%p1688_p5), 0.0   ;;  %s1920_s20 = sld [smem:[#allocation21_spill]] (!%p1688_p5) }
  0x91   : > { %v920_v4 = vpack.c.bf16 (!%p1688_p5), %v452_v2, %v450_v1  ;;  %v451_v5 = vld [vmem:[%s1677_s1 + $0x10] sm:$0xff] (!%p1688_p5)  ;;  %v454_v6 = vld [vmem:[%s1677_s1 + $0x28] sm:$0xff] (!%p1688_p5)  ;;  %v456_v7 = vld [vmem:[%s1677_s1 + $0x38] sm:$0xff] (!%p1688_p5)  ;;  %545 = vmatprep.mubr.f32.mxu0 (!%p1688_p5), %v1358_v8  ;;  %569 = vmatprep.mubr.f32.mxu1 (!%p1688_p5), %v1358_v8  ;;  %s1921_s6 = sld [smem:[#allocation22_spill]] (!%p1688_p5) }
  0x92   : > { %v922_v9 = vpack.c.bf16 (!%p1688_p5), %v451_v5, %v449_v3  ;;  %v924_v10 = vpack.c.bf16 (!%p1688_p5), %v456_v7, %v454_v6  ;;  %v453_v11 = vld [vmem:[%s1677_s1 + $0x20] sm:$0xff] (!%p1688_p5)  ;;  %v455_v12 = vld [vmem:[%s1677_s1 + $0x30] sm:$0xff] (!%p1688_p5)  ;;  %v458_v13 = vld [vmem:[%s1677_s1 + $0x48] sm:$0xff] (!%p1688_p5) }
  0x93   : > { %921 = vmatprep.subr.bf16.mxu0 (!%p1688_p5), %v920_v4  ;;  %952 = vmatprep.subr.bf16.mxu1 (!%p1688_p5), %v920_v4  ;;  %v460_v14 = vld [vmem:[%s1677_s1 + $0x58] sm:$0xff] (!%p1688_p5)  ;;  %v926_v15 = vpack.c.bf16 (!%p1688_p5), %v455_v12, %v453_v11  ;;  %v457_v17 = vld [vmem:[%s1677_s1 + $0x40] sm:$0xff] (!%p1688_p5)  ;;  %v459_v18 = vld [vmem:[%s1677_s1 + $0x50] sm:$0xff] (!%p1688_p5) }
  0x94   : > { %923 = vmatpush1.bf16.msra.mxu0 (!%p1688_p5), %v922_v9  ;;  %960 = vmatpush1.bf16.msra.mxu1 (!%p1688_p5), %v922_v9  ;;  %v928_v16 = vpack.c.bf16 (!%p1688_p5), %v460_v14, %v458_v13  ;;  %v462_v19 = vld [vmem:[%s1677_s1 + $0x68] sm:$0xff] (!%p1688_p5)  ;;  %v464_v20 = vld [vmem:[%s1677_s1 + $0x78] sm:$0xff] (!%p1688_p5)  ;;  %v930_v21 = vpack.c.bf16 (!%p1688_p5), %v459_v18, %v457_v17  ;;  %v461_v23 = vld [vmem:[%s1677_s1 + $0x60] sm:$0xff] (!%p1688_p5) }
  0x95   : > { %925 = vmatprep.subr.bf16.mxu0 (!%p1688_p5), %v924_v10  ;;  %953 = vmatprep.subr.bf16.mxu1 (!%p1688_p5), %v924_v10  ;;  %v932_v22 = vpack.c.bf16 (!%p1688_p5), %v464_v20, %v462_v19  ;;  %v463_v24 = vld [vmem:[%s1677_s1 + $0x70] sm:$0xff] (!%p1688_p5)  ;;  %v466_v25 = vld [vmem:[%s1677_s1 + $0x88] sm:$0xff] (!%p1688_p5)  ;;  %v468_v26 = vld [vmem:[%s1677_s1 + $0x98] sm:$0xff] (!%p1688_p5) }
  0x96   : > { %v934_v27 = vpack.c.bf16 (!%p1688_p5), %v463_v24, %v461_v23  ;;  %v936_v28 = vpack.c.bf16 (!%p1688_p5), %v468_v26, %v466_v25  ;;  %v465_v29 = vld [vmem:[%s1677_s1 + $0x80] sm:$0xff] (!%p1688_p5)  ;;  %v467_v30 = vld [vmem:[%s1677_s1 + $0x90] sm:$0xff] (!%p1688_p5)  ;;  %v470_v31 = vld [vmem:[%s1677_s1 + $0xa8] sm:$0xff] (!%p1688_p5) }
  0x97   : > { %v472_v32 = vld [vmem:[%s1677_s1 + $0xb8] sm:$0xff]  ;;  %v938_v33 = vpack.c.bf16 %v467_v30, %v465_v29  ;;  %v469_v35 = vld [vmem:[%s1677_s1 + $0xa0] sm:$0xff]  ;;  %v471_v36 = vld [vmem:[%s1677_s1 + $0xb0] sm:$0xff] }
  0x98   : > { %927 = vmatpush1.bf16.msra.mxu0 %v926_v15  ;;  %961 = vmatpush1.bf16.msra.mxu1 %v926_v15  ;;  %v940_v34 = vpack.c.bf16 %v472_v32, %v470_v31  ;;  %v474_v37 = vld [vmem:[%s1677_s1 + $0xc8] sm:$0xff]  ;;  %v476_v38 = vld [vmem:[%s1677_s1 + $0xd8] sm:$0xff]  ;;  %v942_v39 = vpack.c.bf16 %v471_v36, %v469_v35  ;;  %v387_v40 = vld [vmem:[%s1670_s29] sm:$0xff] }
  0x99   : > { %929 = vmatprep.subr.bf16.mxu0 %v928_v16  ;;  %954 = vmatprep.subr.bf16.mxu1 %v928_v16  ;;  %v904_v41 = vld [vmem:[%s1920_s20] ss:$0 sm:$0xff]  ;;  %v944_v43 = vpack.c.bf16 %v476_v38, %v474_v37  ;;  %v475_v45 = vld [vmem:[%s1677_s1 + $0xd0] sm:$0xff]  ;;  %v478_v46 = vld [vmem:[%s1677_s1 + $0xe8] sm:$0xff] }
  0x9a   : > { %v391_v42 = vld [vmem:[%s1670_s29 + $0x20] sm:$0xff]  ;;  %v480_v47 = vld [vmem:[%s1677_s1 + $0xf8] sm:$0xff]  ;;  %v402_v48 = vmul.f32 %v904_v41, %v387_v40  ;;  %v388_v52 = vld [vmem:[%s1670_s29 + $0x8] sm:$0xff] }
  0x9b   : > { %v473_v44 = vld [vmem:[%s1677_s1 + $0xc0] sm:$0xff]  ;;  %v406_v49 = vmul.f32 %v904_v41, %v391_v42  ;;  %v392_v53 = vld [vmem:[%s1670_s29 + $0x28] sm:$0xff]  ;;  %v948_v54 = vpack.c.bf16 %v480_v47, %v478_v46  ;;  %v479_v56 = vld [vmem:[%s1677_s1 + $0xf0] sm:$0xff]  ;;  %v403_v59 = vmul.f32 %v904_v41, %v388_v52 }
  0x9c   : > { %931 = vmatpush1.bf16.msra.mxu0 %v930_v21  ;;  %962 = vmatpush1.bf16.msra.mxu1 %v930_v21  ;;  %v946_v50 = vpack.c.bf16 %v475_v45, %v473_v44  ;;  %v905_v51 = vld [vmem:[%s1921_s6] ss:$0 sm:$0xff]  ;;  %v407_v60 = vmul.f32 %v904_v41, %v392_v53  ;;  %v389_v61 = vld [vmem:[%s1670_s29 + $0x10] sm:$0xff]  ;;  %v390_v6 = vld [vmem:[%s1670_s29 + $0x18] sm:$0xff] }
  0x9d   : > { %933 = vmatprep.subr.bf16.mxu0 %v932_v22  ;;  %955 = vmatprep.subr.bf16.mxu1 %v932_v22  ;;  %v477_v55 = vld [vmem:[%s1677_s1 + $0xe0] sm:$0xff]  ;;  %v417_v57 = vadd.f32 %v905_v51, %v402_v48  ;;  %v421_v58 = vadd.f32 %v905_v51, %v406_v49  ;;  %v393_v62 = vld [vmem:[%s1670_s29 + $0x30] sm:$0xff]  ;;  %v404_v0 = vmul.f32 %v904_v41, %v389_v61  ;;  %v394_v7 = vld [vmem:[%s1670_s29 + $0x38] sm:$0xff] }
  0x9e   : > { %v950_v63 = vpack.c.bf16 %v479_v56, %v477_v55  ;;  %v408_v1 = vmul.f32 %v904_v41, %v393_v62  ;;  %v418_v4 = vadd.f32 %v905_v51, %v403_v59  ;;  %v422_v5 = vadd.f32 %v905_v51, %v407_v60  ;;  %v433_v21 = vld [vmem:[#allocation2] sm:$0xff]  ;;  %v434_v23 = vld [vmem:[#allocation2 + $0x8] sm:$0xff]  ;;  %v436_v35 = vld [vmem:[#allocation2 + $0x18] sm:$0xff] }
  0x9f   : > { %v425_v2 = vmax.f32 %v417_v57, 0.0  ;;  %v429_v3 = vmax.f32 %v421_v58, 0.0  ;;  %v419_v9 = vadd.f32 %v905_v51, %v404_v0  ;;  %v405_v10 = vmul.f32 %v904_v41, %v390_v6  ;;  %v441_v22 = vld [vmem:[#allocation2 + $0x40] sm:$0xff]  ;;  %v442_v24 = vld [vmem:[#allocation2 + $0x48] sm:$0xff]  ;;  %v439_v56 = vld [vmem:[#allocation2 + $0x30] sm:$0xff] }
  0xa0   : > { %935 = vmatpush1.bf16.msra.mxu0 %v934_v27  ;;  %963 = vmatpush1.bf16.msra.mxu1 %v934_v27  ;;  %v426_v11 = vmax.f32 %v418_v4, 0.0  ;;  %v430_v12 = vmax.f32 %v422_v5, 0.0  ;;  %v423_v13 = vadd.f32 %v905_v51, %v408_v1  ;;  %v409_v14 = vmul.f32 %v904_v41, %v394_v7  ;;  %v437_v44 = vld [vmem:[#allocation2 + $0x20] sm:$0xff]  ;;  %v438_v46 = vld [vmem:[#allocation2 + $0x28] sm:$0xff]  ;;  %v447_v57 = vld [vmem:[#allocation2 + $0x70] sm:$0xff] }
  0xa1   : > { %937 = vmatprep.subr.bf16.mxu0 %v936_v28  ;;  %956 = vmatprep.subr.bf16.mxu1 %v936_v28  ;;  %v427_v15 = vmax.f32 %v419_v9, 0.0  ;;  %v420_v17 = vadd.f32 %v905_v51, %v405_v10  ;;  %v445_v45 = vld [vmem:[#allocation2 + $0x60] sm:$0xff]  ;;  %v446_v47 = vld [vmem:[#allocation2 + $0x68] sm:$0xff]  ;;  %v440_v58 = vld [vmem:[#allocation2 + $0x38] sm:$0xff] }
  0xa2   : > { %v431_v16 = vmax.f32 %v423_v13, 0.0  ;;  %v424_v18 = vadd.f32 %v905_v51, %v409_v14  ;;  %v448_v59 = vld [vmem:[#allocation2 + $0x78] sm:$0xff] }
  0xa3   : > { %v428_v19 = vmax.f32 %v420_v17, 0.0 }
  0xa4   : > { %939 = vmatpush1.bf16.msra.mxu0 %v938_v33  ;;  %964 = vmatpush1.bf16.msra.mxu1 %v938_v33  ;;  %v432_v20 = vmax.f32 %v424_v18, 0.0  ;;  %v435_v33 = vld [vmem:[#allocation2 + $0x10] sm:$0xff] }
  0xa5   : > { %941 = vmatprep.subr.bf16.mxu0 %v940_v34  ;;  %957 = vmatprep.subr.bf16.mxu1 %v940_v34  ;;  %v443_v34 = vld [vmem:[#allocation2 + $0x50] sm:$0xff] }
  0xa8   : > { %943 = vmatpush1.bf16.msra.mxu0 %v942_v39  ;;  %965 = vmatpush1.bf16.msra.mxu1 %v942_v39 }
  0xa9   : > { %945 = vmatprep.subr.bf16.mxu0 %v944_v43  ;;  %958 = vmatprep.subr.bf16.mxu1 %v944_v43 }
  0xac   : > { %947 = vmatpush1.bf16.msra.mxu0 %v946_v50  ;;  %966 = vmatpush1.bf16.msra.mxu1 %v946_v50 }
  0xad   : > { %949 = vmatprep.subr.bf16.mxu0 %v948_v54  ;;  %959 = vmatprep.subr.bf16.mxu1 %v948_v54 }
  0xb0   : > { %951 = vmatpush1.bf16.msra.mxu0 %v950_v63  ;;  %967 = vmatpush1.bf16.msra.mxu1 %v950_v63 }
  0xb3   : > { %546 = vmatmul.mubr.f32.vlgmr.msra.gmra.mrb[0].mxu0 %v425_v2  ;;  %570 = vmatmul.mubr.f32.vlgmr.msra.gmra.mrb[0].mxu1 %v429_v3 }
  0xb4   : > { %551 = vmatprep.mubr.f32.mxu0 %v1358_v8  ;;  %575 = vmatprep.mubr.f32.mxu1 %v1358_v8 }
  0xb7   : > { %552 = vmatmul.mubr.f32.gmra.mrb[2].mxu0 %v426_v11  ;;  %576 = vmatmul.mubr.f32.gmra.mrb[2].mxu1 %v430_v12 }
  0xb8   : > { %557 = vmatprep.mubr.f32.mxu0 %v1358_v8  ;;  %581 = vmatprep.mubr.f32.mxu1 %v1358_v8 }
  0xbb   : > { %558 = vmatmul.mubr.f32.gmra.mrb[4].mxu0 %v427_v15  ;;  %582 = vmatmul.mubr.f32.gmra.mrb[4].mxu1 %v431_v16 }
  0xbc   : > { %563 = vmatprep.mubr.f32.mxu0 %v1358_v8  ;;  %587 = vmatprep.mubr.f32.mxu1 %v1358_v8  ;;  %v444_v8 = vld [vmem:[#allocation2 + $0x58] sm:$0xff] }
  0xbf   : > { %564 = vmatmul.mubr.f32.gmra.mrb[6].mxu0 %v428_v19  ;;  %588 = vmatmul.mubr.f32.gmra.mrb[6].mxu1 %v432_v20 }
 0x186   : > { %v547_v25 = vpop.f32.mrb[0].mxu0  ;;  %v571_v26 = vpop.f32.mrb[0].mxu1 }
 0x187   : > { %v594_v27 = vadd.f32 %v547_v25, %v433_v21  ;;  %v602_v28 = vadd.f32 %v571_v26, %v441_v22  ;;  %v549_v29 = vpop.f32.mrb[1].mxu0  ;;  %v573_v30 = vpop.f32.mrb[1].mxu1 }
 0x188   : > { %v595_v31 = vadd.f32 %v549_v29, %v434_v23  ;;  %v603_v32 = vadd.f32 %v573_v30, %v442_v24 }
 0x189   : > { %610 = vst [vmem:[#allocation2] sm:$0xff] %v594_v27  ;;  %618 = vst [vmem:[#allocation2 + $0x40] sm:$0xff] %v602_v28 }
 0x18a   : > { %611 = vst [vmem:[#allocation2 + $0x8] sm:$0xff] %v595_v31  ;;  %619 = vst [vmem:[#allocation2 + $0x48] sm:$0xff] %v603_v32  ;;  %v553_v36 = vpop.f32.mrb[2].mxu0  ;;  %v577_v37 = vpop.f32.mrb[2].mxu1 }
 0x18b   : > { %v596_v38 = vadd.f32 %v553_v36, %v435_v33  ;;  %v604_v39 = vadd.f32 %v577_v37, %v443_v34  ;;  %v555_v40 = vpop.f32.mrb[3].mxu0  ;;  %v579_v41 = vpop.f32.mrb[3].mxu1 }
 0x18c   : > { %v597_v42 = vadd.f32 %v555_v40, %v436_v35  ;;  %v605_v43 = vadd.f32 %v579_v41, %v444_v8 }
 0x18d   : > { %612 = vst [vmem:[#allocation2 + $0x10] sm:$0xff] %v596_v38  ;;  %620 = vst [vmem:[#allocation2 + $0x50] sm:$0xff] %v604_v39 }
 0x18e   : > { %613 = vst [vmem:[#allocation2 + $0x18] sm:$0xff] %v597_v42  ;;  %621 = vst [vmem:[#allocation2 + $0x58] sm:$0xff] %v605_v43  ;;  %v559_v48 = vpop.f32.mrb[4].mxu0  ;;  %v583_v49 = vpop.f32.mrb[4].mxu1 }
 0x18f   : > { %v598_v50 = vadd.f32 %v559_v48, %v437_v44  ;;  %v606_v51 = vadd.f32 %v583_v49, %v445_v45  ;;  %v561_v52 = vpop.f32.mrb[5].mxu0  ;;  %v585_v53 = vpop.f32.mrb[5].mxu1 }
 0x190   : > { %v599_v54 = vadd.f32 %v561_v52, %v438_v46  ;;  %v607_v55 = vadd.f32 %v585_v53, %v446_v47 }
 0x191   : > { %614 = vst [vmem:[#allocation2 + $0x20] sm:$0xff] %v598_v50  ;;  %622 = vst [vmem:[#allocation2 + $0x60] sm:$0xff] %v606_v51 }
 0x192   : > { %615 = vst [vmem:[#allocation2 + $0x28] sm:$0xff] %v599_v54  ;;  %623 = vst [vmem:[#allocation2 + $0x68] sm:$0xff] %v607_v55  ;;  %v565_v60 = vpop.f32.mrb[6].mxu0  ;;  %v589_v61 = vpop.f32.mrb[6].mxu1 }
 0x193   : > { %v600_v62 = vadd.f32 %v565_v60, %v439_v56  ;;  %v608_v63 = vadd.f32 %v589_v61, %v447_v57  ;;  %v567_v0 = vpop.f32.mrb[7].mxu0  ;;  %v591_v1 = vpop.f32.mrb[7].mxu1 }
 0x194   : > { %v601_v2 = vadd.f32 %v567_v0, %v440_v58  ;;  %v609_v3 = vadd.f32 %v591_v1, %v448_v59 }
 0x195   : > { %616 = vst [vmem:[#allocation2 + $0x30] sm:$0xff] %v600_v62  ;;  %624 = vst [vmem:[#allocation2 + $0x70] sm:$0xff] %v608_v63 }
 0x196   : > { %617 = vst [vmem:[#allocation2 + $0x38] sm:$0xff] %v601_v2  ;;  %625 = vst [vmem:[#allocation2 + $0x78] sm:$0xff] %v609_v3 }
 0x197 PF: > { %s1922_s29 = sld [smem:[#allocation14_spill]] }
 0x19d   : > { %p906_p4 = scmp.ne.s32.totalorder %s1922_s29, 2 }
 0x19e   : > { %v648_v4 = vlaneseq (!%p906_p4)  ;;  %s1923_s2 = sld [smem:[#allocation23_spill]] (!%p906_p4)  ;;  %s1924_s23 = sld [smem:[#allocation24_spill]] (!%p906_p4)  ;;  %v630_v9 = vld [vmem:[#allocation2] sm:$0xff] (!%p906_p4)  ;;  %v631_v11 = vld [vmem:[#allocation2 + $0x8] sm:$0xff] (!%p906_p4)  ;;  %v632_v13 = vld [vmem:[#allocation2 + $0x10] sm:$0xff] (!%p906_p4) }
 0x19f   : > { %629 = sbr.rel (%p906_p4) target bundleno = 440 (0x1b8), region = 64  ;;  %v633_v14 = vld [vmem:[#allocation2 + $0x18] sm:$0xff] (!%p906_p4)  ;;  %v634_v15 = vld [vmem:[#allocation2 + $0x20] sm:$0xff] (!%p906_p4)  ;;  %v635_v20 = vld [vmem:[#allocation2 + $0x28] sm:$0xff] (!%p906_p4) }
 0x1a0   : > { %v649_v5 = vshrl.u32 (!%p906_p4), %v648_v4, 7  ;;  %v636_v21 = vld [vmem:[#allocation2 + $0x30] sm:$0xff] (!%p906_p4)  ;;  %v637_v22 = vld [vmem:[#allocation2 + $0x38] sm:$0xff] (!%p906_p4)  ;;  %v638_v35 = vld [vmem:[#allocation2 + $0x40] sm:$0xff] (!%p906_p4) }
 0x1a1   : > { %v639_v8 = vld [vmem:[#allocation2 + $0x48] sm:$0xff] (!%p906_p4)  ;;  %v640_v36 = vld [vmem:[#allocation2 + $0x50] sm:$0xff] (!%p906_p4)  ;;  %v641_v41 = vld [vmem:[#allocation2 + $0x58] sm:$0xff] (!%p906_p4) }
 0x1a2   : > { %v650_v10 = vsub.s32 (!%p906_p4), 0, %v649_v5  ;;  %v654_v12 = vsub.s32 (!%p906_p4), 1, %v649_v5  ;;  %v642_v42 = vld [vmem:[#allocation2 + $0x60] sm:$0xff] (!%p906_p4)  ;;  %v643_v43 = vld [vmem:[#allocation2 + $0x68] sm:$0xff] (!%p906_p4)  ;;  %v644_v48 = vld [vmem:[#allocation2 + $0x70] sm:$0xff] (!%p906_p4) }
 0x1a3   : > { %v645_v49 = vld [vmem:[#allocation2 + $0x78] sm:$0xff] (!%p906_p4) }
 0x1a4   : > { %v646_v6 = vld [vmem:[%s1923_s2] sm:$0x3] (!%p906_p4) }
 0x1a5   : > { %v674_v7 = vld [vmem:[%s1924_s23] sm:$0x3] (!%p906_p4)  ;;  %v651_v16 = vrot.slane (!%p906_p4), %v646_v6, %v650_v10  ;;  %v655_v18 = vrot.slane (!%p906_p4), %v646_v6, %v654_v12 }
 0x1a6   : > { %v679_v17 = vrot.slane %v674_v7, %v650_v10  ;;  %v683_v19 = vrot.slane %v674_v7, %v654_v12 }
 0x1a7   : > { %v658_v23 = vmul.f32 %v651_v16, %v630_v9  ;;  %v659_v24 = vmul.f32 %v655_v18, %v631_v11  ;;  %v660_v25 = vmul.f32 %v651_v16, %v632_v13  ;;  %v661_v26 = vmul.f32 %v655_v18, %v633_v14 }
 0x1a8   : > { %v662_v27 = vmul.f32 %v651_v16, %v634_v15  ;;  %v663_v28 = vmul.f32 %v655_v18, %v635_v20  ;;  %v664_v29 = vmul.f32 %v651_v16, %v636_v21  ;;  %v665_v30 = vmul.f32 %v655_v18, %v637_v22 }
 0x1a9   : > { %v686_v31 = vadd.f32 %v679_v17, %v658_v23  ;;  %v687_v32 = vadd.f32 %v683_v19, %v659_v24  ;;  %v688_v33 = vadd.f32 %v679_v17, %v660_v25  ;;  %v689_v34 = vadd.f32 %v683_v19, %v661_v26 }
 0x1aa   : > { %v690_v37 = vadd.f32 %v679_v17, %v662_v27  ;;  %v691_v38 = vadd.f32 %v683_v19, %v663_v28  ;;  %v692_v39 = vadd.f32 %v679_v17, %v664_v29  ;;  %v693_v40 = vadd.f32 %v683_v19, %v665_v30 }
 0x1ab   : > { %v702_v44 = vmax.f32 %v686_v31, 0.0  ;;  %v703_v45 = vmax.f32 %v687_v32, 0.0  ;;  %v704_v46 = vmax.f32 %v688_v33, 0.0  ;;  %v705_v47 = vmax.f32 %v689_v34, 0.0 }
 0x1ac   : > { %v706_v50 = vmax.f32 %v690_v37, 0.0  ;;  %v707_v51 = vmax.f32 %v691_v38, 0.0  ;;  %v708_v52 = vmax.f32 %v692_v39, 0.0  ;;  %v709_v53 = vmax.f32 %v693_v40, 0.0 }
 0x1ad   : > { %718 = vst [vmem:[%s1692_s17] sm:$0xff] %v702_v44  ;;  %719 = vst [vmem:[%s1692_s17 + $0x8] sm:$0xff] %v703_v45  ;;  %v666_v54 = vmul.f32 %v651_v16, %v638_v35  ;;  %v667_v55 = vmul.f32 %v655_v18, %v639_v8  ;;  %v668_v56 = vmul.f32 %v651_v16, %v640_v36 }
 0x1ae   : > { %720 = vst [vmem:[%s1692_s17 + $0x10] sm:$0xff] %v704_v46  ;;  %721 = vst [vmem:[%s1692_s17 + $0x18] sm:$0xff] %v705_v47  ;;  %v669_v57 = vmul.f32 %v655_v18, %v641_v41  ;;  %v670_v58 = vmul.f32 %v651_v16, %v642_v42  ;;  %v671_v59 = vmul.f32 %v655_v18, %v643_v43 }
 0x1af   : > { %722 = vst [vmem:[%s1692_s17 + $0x20] sm:$0xff] %v706_v50  ;;  %723 = vst [vmem:[%s1692_s17 + $0x28] sm:$0xff] %v707_v51  ;;  %v672_v60 = vmul.f32 %v651_v16, %v644_v48  ;;  %v673_v61 = vmul.f32 %v655_v18, %v645_v49  ;;  %v694_v62 = vadd.f32 %v679_v17, %v666_v54 }
 0x1b0   : > { %724 = vst [vmem:[%s1692_s17 + $0x30] sm:$0xff] %v708_v52  ;;  %725 = vst [vmem:[%s1692_s17 + $0x38] sm:$0xff] %v709_v53  ;;  %v695_v63 = vadd.f32 %v683_v19, %v667_v55  ;;  %v696_v0 = vadd.f32 %v679_v17, %v668_v56  ;;  %v697_v1 = vadd.f32 %v683_v19, %v669_v57 }
 0x1b1   : > { %v698_v2 = vadd.f32 %v679_v17, %v670_v58  ;;  %v699_v3 = vadd.f32 %v683_v19, %v671_v59  ;;  %v700_v4 = vadd.f32 %v679_v17, %v672_v60  ;;  %v701_v5 = vadd.f32 %v683_v19, %v673_v61 }
 0x1b2   : > { %v710_v6 = vmax.f32 %v694_v62, 0.0  ;;  %v711_v7 = vmax.f32 %v695_v63, 0.0  ;;  %v712_v9 = vmax.f32 %v696_v0, 0.0  ;;  %v713_v10 = vmax.f32 %v697_v1, 0.0 }
 0x1b3   : > { %v714_v11 = vmax.f32 %v698_v2, 0.0  ;;  %v715_v12 = vmax.f32 %v699_v3, 0.0  ;;  %v716_v13 = vmax.f32 %v700_v4, 0.0  ;;  %v717_v14 = vmax.f32 %v701_v5, 0.0 }
 0x1b4   : > { %726 = vst [vmem:[%s1692_s17 + $0x40] sm:$0xff] %v710_v6  ;;  %727 = vst [vmem:[%s1692_s17 + $0x48] sm:$0xff] %v711_v7 }
 0x1b5   : > { %728 = vst [vmem:[%s1692_s17 + $0x50] sm:$0xff] %v712_v9  ;;  %729 = vst [vmem:[%s1692_s17 + $0x58] sm:$0xff] %v713_v10 }
 0x1b6   : > { %730 = vst [vmem:[%s1692_s17 + $0x60] sm:$0xff] %v714_v11  ;;  %731 = vst [vmem:[%s1692_s17 + $0x68] sm:$0xff] %v715_v12 }
 0x1b7   : > { %732 = vst [vmem:[%s1692_s17 + $0x70] sm:$0xff] %v716_v13  ;;  %733 = vst [vmem:[%s1692_s17 + $0x78] sm:$0xff] %v717_v14 }
 0x1b8 PF: > { %s1925_s19 = sld [smem:[#allocation15_spill]]  ;;  %s908_s30 = sshll.u32 %s1329_s7, 4 }
 0x1b9   : > { %s750_s20 = sshll.u32 %s1692_s17, 4  ;;  %s1926_s27 = sld [smem:[#allocation25_spill]]  ;;  %s1777_s20 = int_to_ptr.vmem [resolvable:$true] %s750_s20 }
 0x1ba   : > { %s1786_s24 = scalar_lea.sflag [#allocation5], %s350_s10  ;;  %s1183_s5 = scalar_lea.vmem %s1777_s20, 2048 }
 0x1bb   : > { %p1184_p13 = scmp.ne.s32.totalorder %s1777_s20, %s1183_s5  ;;  %p1928_p10 = scmp.ne.s32.totalorder %s1908_s8, 0 }
 0x1bc   : > { %s1359_s7 = smov [#allocation8]  }
 0x1bd   : > { %p1185_p11 = pnand %p1184_p13, %p1928_p10  ;;  %s1187_s17 = sshll.u32 %s1359_s7, 4  ;;  %s1188_s17 = int_to_ptr.vmem [resolvable:$false] %s1187_s17 }
 0x1be   : > { %s909_s14 = sshll.u32 %s1925_s19, 6  ;;  %s1189_s23 = scalar_lea.vmem %s1188_s17, 4096 }
 0x1bf   : > { %s747_s13 = sadd.s32 %s909_s14, %s908_s30  ;;  %s1927_s1 = smov %s1926_s27 }
 0x1c0   : > { %s910_s18 = sshll.u32 %s747_s13, 7  ;;  %p1186_p8 = pneg %p1185_p11 }
 0x1c1   : > { %s1782_s2 = scalar_lea.hbm %s1926_s27, %s910_s18  ;;  %p1190_p12 = scmp.lt.s32.totalorder %s1777_s20, %s1188_s17 }
 0x1c2   : > { %p1191_p9 = scmp.lt.s32.totalorder %s1189_s23, %s1183_s5 }
 0x1c4   : > { %p1192_p7 = por %p1191_p9, %p1190_p12 }
 0x1c6   : > { %p1193_p0 = pnand %p1192_p7, %p1186_p8 }
 0x1c8   : > { %1196 = shalt.err (!%p1193_p0)
}
 0x1c9   : > { %s1197_s10 = scalar_lea.hbm %s1782_s2, 2048  ;;  %s1201_s14 = scalar_lea.hbm %s1927_s1, 16384 }
 0x1ca   : > { %p1198_p6 = scmp.ne.s32.totalorder %s1782_s2, %s1197_s10  ;;  %p1202_p5 = scmp.lt.u32.totalorder %s1782_s2, %s1927_s1 }
 0x1cb   : > { %p1203_p1 = scmp.lt.u32.totalorder %s1201_s14, %s1197_s10  ;;  %p1205_p13 = scmp.lt.u32.totalorder %s1197_s10, %s1782_s2 }
 0x1cc   : > { %p1199_p2 = pnand %p1198_p6, %p1928_p10 }
 0x1cd   : > { %p1204_p4 = por %p1203_p1, %p1202_p5 }
 0x1ce   : > { %p1200_p3 = pneg %p1199_p2 }
 0x1cf   : > { %p1206_p11 = por %p1205_p13, %p1204_p4 }
 0x1d1   : > { %p1207_p8 = pnand %p1206_p11, %p1200_p3 }
 0x1d3   : > { %1210 = shalt.err (!%p1207_p8)
}
 0x1d4   : > { %s1360_s6 = smov 256   ;;  %s1361_s29 = smov 16  }
 0x1d5   : > { %972 = dma.vmem_to_hbm [thread:$0]  (%p1928_p10), %s1777_s20, 2048, %s1782_s2, %s1786_s24, %s1360_s6, %s1360_s6, %s1361_s29  }
 0x1d6 PF: > { %p986_p12 = scmp.ge.s32.totalorder %s1349_s12, 2  ;;  %s765_s27 = sand.u32 1, %s1289_s21  }
 0x1d7   : > { %p1929_p9 = scmp.ne.s32.totalorder %s1909_s4, 0  ;;  %s766_s5 = scalar_lea.sflag [#allocation5], %s765_s27 }
 0x1d9   : > { %p982_p7 = pnand %p986_p12, %p1929_p9 }
 0x1db   : > { %1284 = dma.done.wait (!%p982_p7), %s766_s5, 2048  }
 0x1dc   : > { %1286 = vsyncadd (!%p982_p7), %s766_s5, 4294965248  ;;  %s25_s12 = sadd.s32 1, %s1349_s12   ;;  %s1931_s8 = sld [smem:[#allocation12_spill]] }
 0x1dd   : > { %p1815_p0 = scmp.ge.s32.totalorder %s25_s12, 26   ;;  %s1932_s23 = sld [smem:[#allocation19_spill]] }
 0x1de   : > { %s1933_s20 = sld [smem:[#allocation13_spill]]  ;;  %s1934_s29 = sld [smem:[#allocation20_spill]] }
 0x1df   : > { %s1935_s4 = sld [smem:[#allocation16_spill]]  ;;  %s1936_s10 = sld [smem:[#allocation17_spill]] }
 0x1e0   : > { %s1937_s2 = sld [smem:[#allocation18_spill]]  ;;  %s1938_s21 = smov %s1293_s22 }
 0x1e1   : > { %s1941_s24 = smov %s1305_s25  ;;  %s1942_s25 = smov %s1309_s26 }
 0x1e2   : > { %s1940_s22 = smov %s1931_s8  ;;  %s1943_s26 = smov %s1614_s16 }
 0x1e3   : > { %s1944_s27 = smov %s1317_s28  ;;  %s1946_s30 = smov %s1337_s9 }
 0x1e4   : > { %s1945_s28 = smov %s1933_s20  ;;  %s1948_s8 = smov %s1345_s11 }
 0x1e5   : > { %s1947_s7 = smov %s1935_s4  ;;  %s1949_s9 = smov %s1952_s15 }
 0x1e6   : > { %s1950_s11 = smov %s1937_s2  ;;  %24 = sbr.rel (!%p1815_p0) target bundleno = 19 (0x13), region = 114 }
 0x1ed   :  { %771 = vsyncpa [#allocation4], 1 }
 0x1ee   :  { %773 = vsyncpa [#allocation4 + $0x1], 1 }
 0x1ef   :  { %774 = vsyncpa [#allocation7], 1 }
 0x1f0   :  { %776 = vsyncpa [#allocation7 + $0x1], 1 }
 0x1f1   :  { %777 = vsyncpa [#allocation5], 1 }
 0x1f2   :  { %779 = vsyncpa [#allocation5 + $0x1], 1 }

</bundles_post_ra>
